<compile_context>
chip_gen: v5e
topology: v5e:2x2
jax: 0.10.0
libtpu: 0.0.40
codegen_flags: <defaults>
</compile_context>

<pallas_src>
import functools
import math

import jax
import jax.numpy as jnp
from jax import lax
from jax.experimental import pallas as pl
from jax.experimental.pallas import tpu as pltpu

H1 = 64
H2 = 128
SUB = 256          # lane sub-tile width (multiple of 128; matches v6e/v7x MXU)
TARGET_TM = 2048   # target batch lanes per grid step (8 sub-tiles of 256)


def _round_up(x, m):
    return ((x + m - 1) // m) * m


def _device_kind():
    try:
        return jax.devices()[0].device_kind.lower()
    except Exception:
        return ""


def _eltwise_dtype(kind):
    # bf16 VALU exists on v6e/v7x; keep f32 elementwise math on v5* / unknown.
    if ("v6" in kind) or ("v7" in kind) or ("7x" in kind):
        return jnp.bfloat16
    return jnp.float32


def _choose_tile(B, kind):
    tm = min(TARGET_TM, _round_up(max(B, 1), 128))
    if tm > SUB:
        tm = _round_up(tm, SUB)
    if ("v7" in kind) or ("7x" in kind):
        # v7x has 2 TensorCores: keep >= 2 grid steps so "parallel" can shard.
        half = _round_up(max((B + 1) // 2, 1), 128)
        if half > SUB:
            half = _round_up(half, SUB)
        tm = max(128, min(tm, half))
    return tm


def _mlp_kernel(x_ref, w1_ref, b1_ref, w2_ref, b2_ref, w3_ref, b3_ref, o_ref,
                *, sub, n_sub, eltwise_dtype):
    # Resident (constant index_map) params: load once per grid step.
    w1 = w1_ref[...]          # [H1, S]   bf16
    b1 = b1_ref[...]          # [H1, 1]   eltwise_dtype
    w2 = w2_ref[...]          # [H2, H1]  bf16
    b2 = b2_ref[...]          # [H2, 1]   eltwise_dtype
    w3 = w3_ref[...]          # [1, H2]   bf16
    b3 = b3_ref[0, 0]         # scalar    f32 (SMEM)

    # Unrolled sub-loop over lane slices of the batch block: amortizes the
    # grid-step overhead while keeping each iteration's vreg footprint small.
    for j in range(n_sub):
        lo = j * sub
        x_sub = x_ref[lo:lo + sub, :].astype(jnp.bfloat16)          # [sub, S]
        # w1 @ x_sub^T : contract the last dim of both operands; any transpose
        # the compiler needs rides the otherwise-idle XLU slot.
        h1 = lax.dot_general(w1, x_sub, (((1,), (1,)), ((), ())),
                             preferred_element_type=jnp.float32)     # [H1, sub]
        h1 = jnp.maximum(h1.astype(eltwise_dtype) + b1, 0).astype(jnp.bfloat16)
        h2 = jnp.dot(w2, h1, preferred_element_type=jnp.float32)     # [H2, sub]
        h2 = jnp.maximum(h2.astype(eltwise_dtype) + b2, 0).astype(jnp.bfloat16)
        out = jnp.dot(w3, h2, preferred_element_type=jnp.float32)    # [1, sub]
        o_ref[:, lo:lo + sub] = out + b3                             # lane-dense store


def state_value_forward_batched(x_batch, params, *, tm=None):
    """x_batch: [B, state_space] float32. Returns [B, 1] float32 state values."""
    w1, b1, w2, b2, w3, b3 = params
    B, S = x_batch.shape
    kind = _device_kind()
    edt = _eltwise_dtype(kind)

    if tm is None:
        tm = _choose_tile(B, kind)
    tm = max(128, _round_up(tm, 128))
    sub = math.gcd(tm, SUB)          # 128 or 256; always divides tm
    n_sub = tm // sub
    n_tiles = pl.cdiv(B, tm)

    if x_batch.dtype != jnp.float32:
        x_batch = x_batch.astype(jnp.float32)

    kernel = functools.partial(_mlp_kernel, sub=sub, n_sub=n_sub,
                               eltwise_dtype=edt)

    grid_spec = pltpu.PrefetchScalarGridSpec(
        num_scalar_prefetch=0,
        grid=(n_tiles,),
        in_specs=[
            pl.BlockSpec((tm, S), lambda i: (i, 0)),            # x tile (pipelined)
            pl.BlockSpec((H1, S), lambda i: (0, 0)),            # w1 (VMEM-resident)
            pl.BlockSpec((H1, 1), lambda i: (0, 0)),            # b1
            pl.BlockSpec((H2, H1), lambda i: (0, 0)),           # w2
            pl.BlockSpec((H2, 1), lambda i: (0, 0)),            # b2
            pl.BlockSpec((1, H2), lambda i: (0, 0)),            # w3
            pl.BlockSpec(memory_space=pltpu.MemorySpace.SMEM),  # b3 scalar
        ],
        out_specs=pl.BlockSpec((1, tm), lambda i: (0, i)),
    )

    out = pl.pallas_call(
        kernel,
        out_shape=jax.ShapeDtypeStruct((1, B), jnp.float32),
        grid_spec=grid_spec,
        compiler_params=pltpu.CompilerParams(
            dimension_semantics=("parallel",)),   # shard batch tiles over TCs
    )(x_batch, w1, b1.astype(edt), w2, b2.astype(edt), w3,
      b3.reshape(1, 1).astype(jnp.float32))

    return out.T                                                  # [B, 1]


def state_value_forward(x, params):
    """Single flat state [state_space] -> [1, 1] (torch semantics: unsqueeze(0))."""
    # TODO(synk): torch.from_numpy(...) host conversion has no kernel analog;
    # callers pass a JAX array directly.
    return state_value_forward_batched(x.reshape(1, -1), params)


def init_params(key, state_space):
    """nn.Linear-style init (U[-1/sqrt(fan_in), +1/sqrt(fan_in)]); weights kept in
    PyTorch's [out, in] layout as bf16 (MXU inputs), biases [out, 1] in f32."""
    ks = jax.random.split(key, 6)

    def linear(kw, kb, fan_in, fan_out):
        bound = 1.0 / jnp.sqrt(jnp.float32(fan_in))
        w = jax.random.uniform(kw, (fan_out, fan_in), jnp.float32,
                               -bound, bound).astype(jnp.bfloat16)
        b = jax.random.uniform(kb, (fan_out, 1), jnp.float32, -bound, bound)
        return w, b

    w1, b1 = linear(ks[0], ks[1], state_space, H1)
    w2, b2 = linear(ks[2], ks[3], H1, H2)
    w3, b3 = linear(ks[4], ks[5], H2, 1)
    return (w1, b1, w2, b2, w3, b3)


def reference_forward_batched(x_batch, params):
    """Pure-jnp reference replicating the kernel numerics (bf16 matmul inputs,
    f32 MXU accumulation, device-dependent elementwise dtype)."""
    w1, b1, w2, b2, w3, b3 = params
    edt = _eltwise_dtype(_device_kind())
    h = x_batch.astype(jnp.bfloat16)
    a1 = jnp.dot(h, w1.T, preferred_element_type=jnp.float32)
    h1 = jnp.maximum(a1.astype(edt) + b1.T.astype(edt), 0).astype(jnp.bfloat16)
    a2 = jnp.dot(h1, w2.T, preferred_element_type=jnp.float32)
    h2 = jnp.maximum(a2.astype(edt) + b2.T.astype(edt), 0).astype(jnp.bfloat16)
    return jnp.dot(h2, w3.T, preferred_element_type=jnp.float32) + b3.T


if __name__ == "__main__":
    state_space = 8
    key = jax.random.PRNGKey(0)
    k_params, k_x = jax.random.split(key)
    params = init_params(k_params, state_space)

    # Batched path: many value evaluations amortized over one pallas_call.
    B = 300                                     # deliberately not a tile multiple
    xb = jax.random.normal(k_x, (B, state_space), jnp.float32)
    out_b = jax.block_until_ready(state_value_forward_batched(xb, params))
    ref_b = jax.block_until_ready(reference_forward_batched(xb, params))
    assert out_b.shape == (B, 1)
    assert jnp.allclose(out_b, ref_b, atol=2e-3, rtol=2e-3)

    # Single-state path matching the torch module's forward (x.unsqueeze(0)).
    out_1 = jax.block_until_ready(state_value_forward(xb[0], params))
    assert out_1.shape == (1, 1)
    assert jnp.allclose(out_1, ref_b[0:1], atol=2e-3, rtol=2e-3)

    print("KERNEL_OK")
</pallas_src>

<mosaic_0001>
module attributes {stable_mosaic.version = 11 : i64} {
  func.func @_mlp_kernel(%arg0: i32, %arg1: memref<512x8xf32, #tpu.memory_space<vmem>>, %arg2: memref<64x8xbf16, #tpu.memory_space<vmem>>, %arg3: memref<64x1xf32, #tpu.memory_space<vmem>>, %arg4: memref<128x64xbf16, #tpu.memory_space<vmem>>, %arg5: memref<128x1xf32, #tpu.memory_space<vmem>>, %arg6: memref<1x128xbf16, #tpu.memory_space<vmem>>, %arg7: memref<1x1xf32, #tpu.memory_space<smem>>, %arg8: memref<1x512xf32, #tpu.memory_space<vmem>>) attributes {dimension_semantics = [#tpu.dimension_semantics<parallel>], iteration_bounds = array<i64: 1>, scalar_prefetch = 0 : i64, scratch_operands = 0 : i64, tpu.core_type = #tpu.core_type<tc>, window_params = [{transform_indices = @transform_0, window_bounds = array<i64: 512, 8>}, {pipeline_mode = #tpu.pipeline_mode<synchronous>, transform_indices = @transform_1, window_bounds = array<i64: 64, 8>}, {pipeline_mode = #tpu.pipeline_mode<synchronous>, transform_indices = @transform_2, window_bounds = array<i64: 64, 1>}, {pipeline_mode = #tpu.pipeline_mode<synchronous>, transform_indices = @transform_3, window_bounds = array<i64: 128, 64>}, {pipeline_mode = #tpu.pipeline_mode<synchronous>, transform_indices = @transform_4, window_bounds = array<i64: 128, 1>}, {pipeline_mode = #tpu.pipeline_mode<synchronous>, transform_indices = @transform_5, window_bounds = array<i64: 1, 128>}, {transform_indices = @transform_6, window_bounds = array<i64: 1, 1>}, {transform_indices = @transform_7, window_bounds = array<i64: 1, 512>}]} {
    %c0 = arith.constant 0 : index
    %c0_0 = arith.constant 0 : index
    %0 = vector.load %arg2[%c0, %c0_0] : memref<64x8xbf16, #tpu.memory_space<vmem>>, vector<64x8xbf16>
    %c0_1 = arith.constant 0 : index
    %c0_2 = arith.constant 0 : index
    %1 = vector.load %arg3[%c0_1, %c0_2] : memref<64x1xf32, #tpu.memory_space<vmem>>, vector<64x1xf32>
    %c0_3 = arith.constant 0 : index
    %c0_4 = arith.constant 0 : index
    %2 = vector.load %arg4[%c0_3, %c0_4] : memref<128x64xbf16, #tpu.memory_space<vmem>>, vector<128x64xbf16>
    %c0_5 = arith.constant 0 : index
    %c0_6 = arith.constant 0 : index
    %3 = vector.load %arg5[%c0_5, %c0_6] : memref<128x1xf32, #tpu.memory_space<vmem>>, vector<128x1xf32>
    %c0_7 = arith.constant 0 : index
    %c0_8 = arith.constant 0 : index
    %4 = vector.load %arg6[%c0_7, %c0_8] : memref<1x128xbf16, #tpu.memory_space<vmem>>, vector<1x128xbf16>
    %c0_9 = arith.constant 0 : index
    %c0_10 = arith.constant 0 : index
    %5 = memref.load %arg7[%c0_9, %c0_10] : memref<1x1xf32, #tpu.memory_space<smem>>
    %c0_11 = arith.constant 0 : index
    %c0_12 = arith.constant 0 : index
    %6 = vector.load %arg1[%c0_11, %c0_12] : memref<512x8xf32, #tpu.memory_space<vmem>>, vector<256x8xf32>
    %7 = arith.truncf %6 : vector<256x8xf32> to vector<256x8xbf16>
    %cst = arith.constant dense<0.000000e+00> : vector<64x256xf32>
    %8 = tpu.matmul %0, %7, %cst {dimension_numbers = #tpu.dot_dimension_numbers<[1], [1], [0], [0], [0, 0, 1, 0], [], []>} : vector<64x8xbf16>, vector<256x8xbf16>, vector<64x256xf32> -> vector<64x256xf32>
    %9 = vector.broadcast %1 : vector<64x1xf32> to vector<64x256xf32>
    %10 = arith.addf %8, %9 : vector<64x256xf32>
    %cst_13 = arith.constant 0.000000e+00 : f32
    %11 = vector.broadcast %cst_13 : f32 to vector<64x256xf32>
    %12 = arith.maximumf %10, %11 : vector<64x256xf32>
    %13 = arith.truncf %12 : vector<64x256xf32> to vector<64x256xbf16>
    %cst_14 = arith.constant dense<0.000000e+00> : vector<128x256xf32>
    %14 = tpu.matmul %2, %13, %cst_14 {dimension_numbers = #tpu.dot_dimension_numbers<[1], [0], [0], [1], [0, 0, 1, 1], [], []>} : vector<128x64xbf16>, vector<64x256xbf16>, vector<128x256xf32> -> vector<128x256xf32>
    %15 = vector.broadcast %3 : vector<128x1xf32> to vector<128x256xf32>
    %16 = arith.addf %14, %15 : vector<128x256xf32>
    %cst_15 = arith.constant 0.000000e+00 : f32
    %17 = vector.broadcast %cst_15 : f32 to vector<128x256xf32>
    %18 = arith.maximumf %16, %17 : vector<128x256xf32>
    %19 = arith.truncf %18 : vector<128x256xf32> to vector<128x256xbf16>
    %cst_16 = arith.constant dense<0.000000e+00> : vector<1x256xf32>
    %20 = tpu.matmul %4, %19, %cst_16 {dimension_numbers = #tpu.dot_dimension_numbers<[1], [0], [0], [1], [0, 0, 1, 1], [], []>} : vector<1x128xbf16>, vector<128x256xbf16>, vector<1x256xf32> -> vector<1x256xf32>
    %21 = vector.broadcast %5 : f32 to vector<1x256xf32>
    %22 = arith.addf %20, %21 : vector<1x256xf32>
    %c0_17 = arith.constant 0 : index
    %c0_18 = arith.constant 0 : index
    %23 = vector.load %arg8[%c0_17, %c0_18] : memref<1x512xf32, #tpu.memory_space<vmem>>, vector<1x256xf32>
    tpu.vector_store %arg8[%c0_17, %c0_18], %22 {strides = array<i32>} : memref<1x512xf32, #tpu.memory_space<vmem>>, vector<1x256xf32>,
    %c256 = arith.constant 256 : index
    %c0_19 = arith.constant 0 : index
    %24 = vector.load %arg1[%c256, %c0_19] : memref<512x8xf32, #tpu.memory_space<vmem>>, vector<256x8xf32>
    %25 = arith.truncf %24 : vector<256x8xf32> to vector<256x8xbf16>
    %cst_20 = arith.constant dense<0.000000e+00> : vector<64x256xf32>
    %26 = tpu.matmul %0, %25, %cst_20 {dimension_numbers = #tpu.dot_dimension_numbers<[1], [1], [0], [0], [0, 0, 1, 0], [], []>} : vector<64x8xbf16>, vector<256x8xbf16>, vector<64x256xf32> -> vector<64x256xf32>
    %27 = vector.broadcast %1 : vector<64x1xf32> to vector<64x256xf32>
    %28 = arith.addf %26, %27 : vector<64x256xf32>
    %cst_21 = arith.constant 0.000000e+00 : f32
    %29 = vector.broadcast %cst_21 : f32 to vector<64x256xf32>
    %30 = arith.maximumf %28, %29 : vector<64x256xf32>
    %31 = arith.truncf %30 : vector<64x256xf32> to vector<64x256xbf16>
    %cst_22 = arith.constant dense<0.000000e+00> : vector<128x256xf32>
    %32 = tpu.matmul %2, %31, %cst_22 {dimension_numbers = #tpu.dot_dimension_numbers<[1], [0], [0], [1], [0, 0, 1, 1], [], []>} : vector<128x64xbf16>, vector<64x256xbf16>, vector<128x256xf32> -> vector<128x256xf32>
    %33 = vector.broadcast %3 : vector<128x1xf32> to vector<128x256xf32>
    %34 = arith.addf %32, %33 : vector<128x256xf32>
    %cst_23 = arith.constant 0.000000e+00 : f32
    %35 = vector.broadcast %cst_23 : f32 to vector<128x256xf32>
    %36 = arith.maximumf %34, %35 : vector<128x256xf32>
    %37 = arith.truncf %36 : vector<128x256xf32> to vector<128x256xbf16>
    %cst_24 = arith.constant dense<0.000000e+00> : vector<1x256xf32>
    %38 = tpu.matmul %4, %37, %cst_24 {dimension_numbers = #tpu.dot_dimension_numbers<[1], [0], [0], [1], [0, 0, 1, 1], [], []>} : vector<1x128xbf16>, vector<128x256xbf16>, vector<1x256xf32> -> vector<1x256xf32>
    %39 = vector.broadcast %5 : f32 to vector<1x256xf32>
    %40 = arith.addf %38, %39 : vector<1x256xf32>
    %c0_25 = arith.constant 0 : index
    %c256_26 = arith.constant 256 : index
    %41 = vector.load %arg8[%c0_25, %c256_26] : memref<1x512xf32, #tpu.memory_space<vmem>>, vector<1x256xf32>
    tpu.vector_store %arg8[%c0_25, %c256_26], %40 {strides = array<i32>} : memref<1x512xf32, #tpu.memory_space<vmem>>, vector<1x256xf32>,
    return
  }
  func.func @transform_0(%arg0: i32) -> (i32, i32) {
    %c0_i32 = arith.constant 0 : i32
    %c0_i32_0 = arith.constant 0 : i32
    return %arg0, %c0_i32 : i32, i32
  }
  func.func @transform_1(%arg0: i32) -> (i32, i32) {
    %c0_i32 = arith.constant 0 : i32
    %c0_i32_0 = arith.constant 0 : i32
    %c0_i32_1 = arith.constant 0 : i32
    return %c0_i32, %c0_i32_0 : i32, i32
  }
  func.func @transform_2(%arg0: i32) -> (i32, i32) {
    %c0_i32 = arith.constant 0 : i32
    %c0_i32_0 = arith.constant 0 : i32
    %c0_i32_1 = arith.constant 0 : i32
    return %c0_i32, %c0_i32_0 : i32, i32
  }
  func.func @transform_3(%arg0: i32) -> (i32, i32) {
    %c0_i32 = arith.constant 0 : i32
    %c0_i32_0 = arith.constant 0 : i32
    %c0_i32_1 = arith.constant 0 : i32
    return %c0_i32, %c0_i32_0 : i32, i32
  }
  func.func @transform_4(%arg0: i32) -> (i32, i32) {
    %c0_i32 = arith.constant 0 : i32
    %c0_i32_0 = arith.constant 0 : i32
    %c0_i32_1 = arith.constant 0 : i32
    return %c0_i32, %c0_i32_0 : i32, i32
  }
  func.func @transform_5(%arg0: i32) -> (i32, i32) {
    %c0_i32 = arith.constant 0 : i32
    %c0_i32_0 = arith.constant 0 : i32
    %c0_i32_1 = arith.constant 0 : i32
    return %c0_i32, %c0_i32_0 : i32, i32
  }
  func.func @transform_6(%arg0: i32) -> (i32, i32) {
    %c0_i32 = arith.constant 0 : i32
    %c0_i32_0 = arith.constant 0 : i32
    %c0_i32_1 = arith.constant 0 : i32
    return %c0_i32, %c0_i32_0 : i32, i32
  }
  func.func @transform_7(%arg0: i32) -> (i32, i32) {
    %c0_i32 = arith.constant 0 : i32
    %c0_i32_0 = arith.constant 0 : i32
    return %c0_i32, %arg0 : i32, i32
  }
}

</mosaic_0001>

<bundles_post_ra>
// kernel: tpu_custom_call.1
= control target key start
LH: loop header
LB: loop body
LE: loop exit
PB: predicated region body
PF: predicated region fallthrough
CT: control target
= control target key end

     0   :  { %13 = vsyncpa [#allocation4], 0  ;;  %vm187_vm0 = vcmask 64512   ;;  %v1170_v39 = vmov 0   ;;  %vm450_vm1 = vcmask 523264   ;;  %vm651_vm2 = vcmask 1040384   ;;  %s1905_s0 = inlined_call_operand.vmem [shape: f32[300,8], index: 0, kind: input, shape index: {}]   ;;  %s1906_s1 = inlined_call_operand.vmem [shape: bf16[64,8], index: 1, kind: input, shape index: {}]   ;;  %s1907_s2 = inlined_call_operand.vmem [shape: f32[64,1], index: 2, kind: input, shape index: {}]   ;;  %s1908_s3 = inlined_call_operand.vmem [shape: bf16[128,64], index: 3, kind: input, shape index: {}]   ;;  %s1909_s4 = inlined_call_operand.vmem [shape: f32[128,1], index: 4, kind: input, shape index: {}]   ;;  %s1910_s5 = inlined_call_operand.vmem [shape: bf16[1,128], index: 5, kind: input, shape index: {}]   ;;  %s1911_s6 = inlined_call_operand.<no memory space> [shape: f32[1,1], index: 6, kind: input, shape index: {}]   ;;  %s1912_s7 = inlined_call_operand.hbm [shape: f32[1,300], index: 7, kind: output, shape index: {}]  }
   0x1   :  { %v93_v0 = vld [vmem:[%s1905_s0 + $0x70] sm:$0xff]  ;;  %v94_v1 = vld [vmem:[%s1905_s0 + $0x78] sm:$0xff]  ;;  %v91_v6 = vld [vmem:[%s1905_s0 + $0x60] sm:$0xff]  ;;  %1141 = vset.pattern.permute.xlu0 %v1170_v39  ;;  %1142 = vset.pattern.permute.xlu1 %v1170_v39 }
   0x2   :  { %v118_v2 = vpack.c.bf16 %v94_v1, %v93_v0  ;;  %v109_v3 = vld [vmem:[%s1905_s0 + $0xf0] sm:$0xff]  ;;  %v110_v4 = vld [vmem:[%s1905_s0 + $0xf8] sm:$0xff]  ;;  %v92_v7 = vld [vmem:[%s1905_s0 + $0x68] sm:$0xff]  ;;  %1143 = vset.pattern.permute.xlu2 %v1170_v39 }
   0x3   :  { %v126_v5 = vpack.c.bf16 %v110_v4, %v109_v3  ;;  %v107_v9 = vld [vmem:[%s1905_s0 + $0xe0] sm:$0xff]  ;;  %v108_v10 = vld [vmem:[%s1905_s0 + $0xe8] sm:$0xff]  ;;  %v117_v12 = vpack.c.bf16 %v92_v7, %v91_v6  ;;  %v89_v16 = vld [vmem:[%s1905_s0 + $0x50] sm:$0xff] }
   0x4   :  { %v222_v8 = vsel %vm187_vm0, %v118_v2, 0  ;;  %v125_v13 = vpack.c.bf16 %v108_v10, %v107_v9  ;;  %v90_v17 = vld [vmem:[%s1905_s0 + $0x58] sm:$0xff]  ;;  %v105_v18 = vld [vmem:[%s1905_s0 + $0xd0] sm:$0xff]  ;;  %v87_v24 = vld [vmem:[%s1905_s0 + $0x40] sm:$0xff] }
   0x5   :  { %248 = vmatpush.bf16.xpose.msra.mxu0 %v222_v8  ;;  %v246_v11 = vsel %vm187_vm0, %v126_v5, 0  ;;  %v219_v14 = vsel %vm187_vm0, %v117_v12, 0  ;;  %v106_v19 = vld [vmem:[%s1905_s0 + $0xd8] sm:$0xff]  ;;  %v116_v20 = vpack.c.bf16 %v90_v17, %v89_v16  ;;  %v88_v25 = vld [vmem:[%s1905_s0 + $0x48] sm:$0xff]  ;;  %v103_v26 = vld [vmem:[%s1905_s0 + $0xc0] sm:$0xff] }
   0x6   :  { %277 = vmatpush.bf16.xpose.msra.mxu1 %v246_v11  ;;  %v243_v15 = vsel %vm187_vm0, %v125_v13, 0  ;;  %v124_v21 = vpack.c.bf16 %v106_v19, %v105_v18  ;;  %v104_v27 = vld [vmem:[%s1905_s0 + $0xc8] sm:$0xff]  ;;  %v115_v28 = vpack.c.bf16 %v88_v25, %v87_v24  ;;  %v85_v32 = vld [vmem:[%s1905_s0 + $0x30] sm:$0xff]  ;;  %v86_v33 = vld [vmem:[%s1905_s0 + $0x38] sm:$0xff] }
   0x7   :  { %v216_v22 = vsel %vm187_vm0, %v116_v20, 0  ;;  %v123_v29 = vpack.c.bf16 %v104_v27, %v103_v26  ;;  %v101_v34 = vld [vmem:[%s1905_s0 + $0xb0] sm:$0xff]  ;;  %v102_v35 = vld [vmem:[%s1905_s0 + $0xb8] sm:$0xff]  ;;  %v114_v36 = vpack.c.bf16 %v86_v33, %v85_v32  ;;  %v83_v42 = vld [vmem:[%s1905_s0 + $0x20] sm:$0xff] }
   0x8   :  { %v240_v23 = vsel %vm187_vm0, %v124_v21, 0  ;;  %v213_v30 = vsel %vm187_vm0, %v115_v28, 0  ;;  %v43_v37 = vld [vmem:[%s1907_s2 + $0x30] sm:$0xff]  ;;  %v122_v38 = vpack.c.bf16 %v102_v35, %v101_v34  ;;  %v84_v43 = vld [vmem:[%s1905_s0 + $0x28] sm:$0xff]  ;;  %v99_v44 = vld [vmem:[%s1905_s0 + $0xa0] sm:$0xff] }
   0x9   :  { %v237_v31 = vsel %vm187_vm0, %v123_v29, 0  ;;  %159 = vperm.xlu0 %1141, %v43_v37   ;;  %v210_v40 = vsel %vm187_vm0, %v114_v36, 0  ;;  %v100_v45 = vld [vmem:[%s1905_s0 + $0xa8] sm:$0xff]  ;;  %v44_v46 = vld [vmem:[%s1907_s2 + $0x38] sm:$0xff]  ;;  %v41_v47 = vld [vmem:[%s1907_s2 + $0x20] sm:$0xff]  ;;  %v113_v48 = vpack.c.bf16 %v84_v43, %v83_v42 }
   0xa   :  { %v234_v41 = vsel %vm187_vm0, %v122_v38, 0  ;;  %149 = vperm.xlu1 %1142, %v41_v47   ;;  %v121_v49 = vpack.c.bf16 %v100_v45, %v99_v44  ;;  %v81_v52 = vld [vmem:[%s1905_s0 + $0x10] sm:$0xff]  ;;  %v82_v53 = vld [vmem:[%s1905_s0 + $0x18] sm:$0xff]  ;;  %v42_v54 = vld [vmem:[%s1907_s2 + $0x28] sm:$0xff] }
   0xb   :  { %v207_v50 = vsel %vm187_vm0, %v113_v48, 0  ;;  %v97_v55 = vld [vmem:[%s1905_s0 + $0x90] sm:$0xff]  ;;  %v98_v56 = vld [vmem:[%s1905_s0 + $0x98] sm:$0xff]  ;;  %v37_v57 = vld [vmem:[%s1907_s2] sm:$0xff]  ;;  %v112_v58 = vpack.c.bf16 %v82_v53, %v81_v52 }
   0xc   :  { %v231_v51 = vsel %vm187_vm0, %v121_v49, 0  ;;  %v120_v59 = vpack.c.bf16 %v98_v56, %v97_v55  ;;  %v79_v62 = vld [vmem:[%s1905_s0] sm:$0xff]  ;;  %v80_v63 = vld [vmem:[%s1905_s0 + $0x8] sm:$0xff]  ;;  %v76_v3 = vld [vmem:[%s1909_s4 + $0x78] sm:$0xff] }
   0xd   :  { %249 = vmatpush.bf16.xpose.msra.mxu0 %v219_v14  ;;  %v204_v60 = vsel %vm187_vm0, %v112_v58, 0  ;;  %v95_v0 = vld [vmem:[%s1905_s0 + $0x80] sm:$0xff]  ;;  %v96_v1 = vld [vmem:[%s1905_s0 + $0x88] sm:$0xff]  ;;  %v111_v4 = vpack.c.bf16 %v80_v63, %v79_v62  ;;  %v39_v10 = vld [vmem:[%s1907_s2 + $0x10] sm:$0xff] }
   0xe   :  { %278 = vmatpush.bf16.xpose.msra.mxu1 %v243_v15  ;;  %v228_v61 = vsel %vm187_vm0, %v120_v59, 0  ;;  %v38_v2 = vld [vmem:[%s1907_s2 + $0x8] sm:$0xff]  ;;  %v119_v5 = vpack.c.bf16 %v96_v1, %v95_v0  ;;  %v73_v8 = vld [vmem:[%s1909_s4 + $0x60] sm:$0xff]  ;;  %v71_v11 = vld [vmem:[%s1909_s4 + $0x50] sm:$0xff]  ;;  %139 = vperm.xlu2 %1143, %v39_v10  }
   0xf   :  { %v201_v6 = vsel %vm187_vm0, %v111_v4, 0  ;;  %v1351_v9 = vld [vmem:[%s1906_s1] sm:$0xff]  ;;  %v72_v12 = vld [vmem:[%s1909_s4 + $0x58] sm:$0xff]  ;;  %v70_v14 = vld [vmem:[%s1909_s4 + $0x48] sm:$0xff] }
  0x10   :  { %v225_v7 = vsel %vm187_vm0, %v119_v5, 0  ;;  %v40_v13 = vld [vmem:[%s1907_s2 + $0x18] sm:$0xff]  ;;  %v67_v15 = vld [vmem:[%s1909_s4 + $0x30] sm:$0xff]  ;;  %v1378_v16 = vld [vmem:[%s1906_s1 + $0x8] sm:$0xff] }
  0x11   :  { %164 = vperm.xlu0 %1141, %v44_v46   ;;  %v75_v17 = vld [vmem:[%s1909_s4 + $0x70] sm:$0xff]  ;;  %v65_v18 = vld [vmem:[%s1909_s4 + $0x20] sm:$0xff]  ;;  %v66_v19 = vld [vmem:[%s1909_s4 + $0x28] sm:$0xff] }
  0x12   :  { %154 = vperm.xlu1 %1142, %v42_v54   ;;  %v74_v20 = vld [vmem:[%s1909_s4 + $0x68] sm:$0xff]  ;;  %v64_v21 = vld [vmem:[%s1909_s4 + $0x18] sm:$0xff]  ;;  %v69_v24 = vld [vmem:[%s1909_s4 + $0x40] sm:$0xff] }
  0x13   :  { %v68_v25 = vld [vmem:[%s1909_s4 + $0x38] sm:$0xff]  ;;  %v63_v27 = vld [vmem:[%s1909_s4 + $0x10] sm:$0xff]  ;;  %v62_v28 = vld [vmem:[%s1909_s4 + $0x8] sm:$0xff] }
  0x14   :  { %v1420_v26 = vld [vmem:[%s1906_s1 + $0x18] sm:$0xff] }
  0x15   :  { %250 = vmatpush.bf16.xpose.msra.mxu0 %v216_v22  ;;  %v61_v22 = vld [vmem:[%s1909_s4] sm:$0xff] }
  0x16   :  { %279 = vmatpush.bf16.xpose.msra.mxu1 %v240_v23  ;;  %144 = vperm.xlu2 %1143, %v40_v13   ;;  %v1405_v23 = vld [vmem:[%s1906_s1 + $0x10] sm:$0xff] }
  0x19   :  { %129 = vperm.xlu0 %1141, %v37_v57  }
  0x1a   :  { %134 = vperm.xlu1 %1142, %v38_v2  }
  0x1d   :  { %251 = vmatpush.bf16.xpose.msra.mxu0 %v213_v30 }
  0x1e   :  { %280 = vmatpush.bf16.xpose.msra.mxu1 %v237_v31  ;;  %402 = vperm.xlu2 %1143, %v75_v17  }
  0x21   :  { %407 = vperm.xlu0 %1141, %v76_v3  }
  0x22   :  { %392 = vperm.xlu1 %1142, %v73_v8  }
  0x25   :  { %252 = vmatpush.bf16.xpose.msra.mxu0 %v210_v40 }
  0x26   :  { %281 = vmatpush.bf16.xpose.msra.mxu1 %v234_v41  ;;  %397 = vperm.xlu2 %1143, %v74_v20  }
  0x29   :  { %382 = vperm.xlu0 %1141, %v71_v11  }
  0x2a   :  { %387 = vperm.xlu1 %1142, %v72_v12  }
  0x2d   :  { %253 = vmatpush.bf16.xpose.msra.mxu0 %v207_v50 }
  0x2e   :  { %282 = vmatpush.bf16.xpose.msra.mxu1 %v231_v51  ;;  %372 = vperm.xlu2 %1143, %v69_v24  }
  0x31   :  { %377 = vperm.xlu0 %1141, %v70_v14  }
  0x32   :  { %362 = vperm.xlu1 %1142, %v67_v15  }
  0x35   :  { %254 = vmatpush.bf16.xpose.msra.mxu0 %v204_v60 }
  0x36   :  { %283 = vmatpush.bf16.xpose.msra.mxu1 %v228_v61  ;;  %367 = vperm.xlu2 %1143, %v68_v25  }
  0x39   :  { %352 = vperm.xlu0 %1141, %v65_v18  }
  0x3a   :  { %357 = vperm.xlu1 %1142, %v66_v19  }
  0x3d   :  { %255 = vmatpush.bf16.xpose.msra.mxu0 %v201_v6 }
  0x3e   :  { %284 = vmatpush.bf16.xpose.msra.mxu1 %v225_v7  ;;  %342 = vperm.xlu2 %1143, %v63_v27  }
  0x41   :  { %347 = vperm.xlu0 %1141, %v64_v21  }
  0x42   :  { %332 = vperm.xlu1 %1142, %v61_v22  }
  0x44   :  { %1047 = vmatmul.msk.bf16.vlgmr.msra.gmra.mxu0 %vm187_vm0, %v1351_v9 }
  0x45   :  { %1051 = vmatmul.msk.bf16.vlgmr.msra.gmra.mxu1 %vm187_vm0, %v1351_v9 }
  0x46   :  { %337 = vperm.xlu2 %1143, %v62_v28  }
  0x54   :  { %1048 = vmatmul.msk.bf16.gmra.mxu0 %vm187_vm0, %v1378_v16 }
  0x55   :  { %1052 = vmatmul.msk.bf16.gmra.mxu1 %vm187_vm0, %v1378_v16 }
  0x64   :  { %1049 = vmatmul.msk.bf16.gmra.mxu0 %vm187_vm0, %v1405_v23 }
  0x65   :  { %1053 = vmatmul.msk.bf16.gmra.mxu1 %vm187_vm0, %v1405_v23 }
  0x68   :  { %v1436_v45 = vpop.permute.xlu2 %139 }
  0x70   :  { %v1449_v59 = vpop.permute.xlu2 %144 }
  0x74   :  { %1050 = vmatmul.msk.bf16.gmra.mxu0 %vm187_vm0, %v1420_v26 }
  0x75   :  { %1054 = vmatmul.msk.bf16.gmra.mxu1 %vm187_vm0, %v1420_v26 }
  0x7b   :  { %v1434_v42 = vpop.permute.xlu0 %159 }
  0x7c   :  { %v1432_v41 = vpop.permute.xlu1 %149 }
  0x83   :  { %v1440_v47 = vpop.permute.xlu0 %164 }
  0x84   :  { %v1438_v46 = vpop.permute.xlu1 %154 }
  0x8b   :  { %v1457_v8 = vpop.permute.xlu0 %129 }
  0x8c   :  { %v1453_v2 = vpop.permute.xlu1 %134 }
  0xc1   :  { %v257_v29 = vpop.f32.mrf.mxu0 }
  0xc2   :  { %v286_v30 = vpop.f32.mrf.mxu1  ;;  %v258_v19 = vadd.f32 %v257_v29, %v1457_v8  ;;  %v1467_v29 = vld [vmem:[%s1908_s3] sm:$0xff] }
  0xc3   :  { %v287_v21 = vadd.f32 %v286_v30, %v1457_v8  ;;  %v673_v30 = vld [vmem:[%s1905_s0 + $0x170] sm:$0xff] }
  0xc9   :  { %v259_v31 = vpop.f32.mrf.mxu0 }
  0xca   :  { %v288_v32 = vpop.f32.mrf.mxu1  ;;  %v260_v12 = vadd.f32 %v259_v31, %v1453_v2  ;;  %v307_v31 = vmax.f32 %v287_v21, 0.0 }
  0xcb   :  { %v289_v15 = vadd.f32 %v288_v32, %v1453_v2 }
  0xcc   :  { %v308_v24 = vmax.f32 %v260_v12, 0.0 }
  0xcd   :  { %v309_v27 = vmax.f32 %v289_v15, 0.0  ;;  %v665_v15 = vld [vmem:[%s1905_s0 + $0x130] sm:$0xff] }
  0xcf   :  { %v323_v32 = vpack.c.bf16 %v309_v27, %v307_v31  ;;  %v679_v27 = vld [vmem:[%s1905_s0 + $0x1a0] sm:$0xff] }
  0xd1   :  { %v262_v33 = vpop.f32.mrf.mxu0 }
  0xd2   :  { %v291_v34 = vpop.f32.mrf.mxu1  ;;  %v263_v6 = vadd.f32 %v262_v33, %v1436_v45  ;;  %v306_v33 = vmax.f32 %v258_v19, 0.0 }
  0xd3   :  { %v292_v10 = vadd.f32 %v291_v34, %v1436_v45 }
  0xd4   :  { %v310_v20 = vmax.f32 %v263_v6, 0.0  ;;  %v322_v34 = vpack.c.bf16 %v308_v24, %v306_v33  ;;  %v683_v6 = vld [vmem:[%s1905_s0 + $0x1c0] sm:$0xff]  ;;  %v680_v33 = vld [vmem:[%s1905_s0 + $0x1a8] sm:$0xff] }
  0xd5   :  { %v311_v22 = vmax.f32 %v292_v10, 0.0  ;;  %v684_v10 = vld [vmem:[%s1905_s0 + $0x1c8] sm:$0xff]  ;;  %v663_v24 = vld [vmem:[%s1905_s0 + $0x120] sm:$0xff] }
  0xd9   :  { %v264_v35 = vpop.f32.mrf.mxu0 }
  0xda   :  { %v293_v36 = vpop.f32.mrf.mxu1  ;;  %v265_v63 = vadd.f32 %v264_v35, %v1449_v59  ;;  %v674_v35 = vld [vmem:[%s1905_s0 + $0x178] sm:$0xff] }
  0xdb   :  { %v294_v3 = vadd.f32 %v293_v36, %v1449_v59  ;;  %v689_v36 = vld [vmem:[%s1905_s0 + $0x1f0] sm:$0xff] }
  0xdc   :  { %v312_v13 = vmax.f32 %v265_v63, 0.0 }
  0xdd   :  { %v313_v17 = vmax.f32 %v294_v3, 0.0  ;;  %v1536_v3 = vld [vmem:[%s1908_s3 + $0x18] sm:$0xff] }
  0xde   :  { %v324_v25 = vpack.c.bf16 %v312_v13, %v310_v20  ;;  %v682_v20 = vld [vmem:[%s1905_s0 + $0x1b8] sm:$0xff] }
  0xdf   :  { %v325_v28 = vpack.c.bf16 %v313_v17, %v311_v22  ;;  %v666_v17 = vld [vmem:[%s1905_s0 + $0x138] sm:$0xff] }
  0xe0   :  { %v694_v19 = vpack.c.bf16 %v666_v17, %v665_v15 }
  0xe1   :  { %v267_v37 = vpop.f32.mrf.mxu0 }
  0xe2   :  { %v296_v38 = vpop.f32.mrf.mxu1  ;;  %v268_v56 = vadd.f32 %v267_v37, %v1432_v41  ;;  %v698_v37 = vpack.c.bf16 %v674_v35, %v673_v30  ;;  %v717_v22 = vsel %vm187_vm0, %v694_v19, 0  ;;  %v1596_v35 = vld [vmem:[%s1908_s3 + $0x28] sm:$0xff] }
  0xe3   :  { %v297_v60 = vadd.f32 %v296_v38, %v1432_v41  ;;  %v690_v38 = vld [vmem:[%s1905_s0 + $0x1f8] sm:$0xff] }
  0xe4   :  { %v314_v7 = vmax.f32 %v268_v56, 0.0  ;;  %v1513_v56 = vld [vmem:[%s1908_s3 + $0x10] sm:$0xff] }
  0xe5   :  { %v315_v11 = vmax.f32 %v297_v60, 0.0  ;;  %v685_v60 = vld [vmem:[%s1905_s0 + $0x1d0] sm:$0xff] }
  0xe9   :  { %v269_v39 = vpop.f32.mrf.mxu0 }
  0xea   :  { %v298_v40 = vpop.f32.mrf.mxu1  ;;  %v270_v51 = vadd.f32 %v269_v39, %v1438_v46  ;;  %v706_v39 = vpack.c.bf16 %v690_v38, %v689_v36  ;;  %v661_v36 = vld [vmem:[%s1905_s0 + $0x110] sm:$0xff] }
  0xeb   :  { %v299_v54 = vadd.f32 %v298_v40, %v1438_v46  ;;  %v729_v40 = vsel %vm187_vm0, %v698_v37, 0  ;;  %v662_v37 = vld [vmem:[%s1905_s0 + $0x118] sm:$0xff]  ;;  %v677_v38 = vld [vmem:[%s1905_s0 + $0x190] sm:$0xff] }
  0xec   :  { %v316_v0 = vmax.f32 %v270_v51, 0.0 }
  0xed   :  { %v317_v4 = vmax.f32 %v299_v54, 0.0 }
  0xee   :  { %v326_v14 = vpack.c.bf16 %v316_v0, %v314_v7 }
  0xef   :  { %v327_v18 = vpack.c.bf16 %v317_v4, %v315_v11  ;;  %v667_v4 = vld [vmem:[%s1905_s0 + $0x140] sm:$0xff]  ;;  %v703_v11 = vpack.c.bf16 %v684_v10, %v683_v6 }
  0xf1   :  { %v272_v43 = vpop.f32.mrf.mxu0  ;;  %v744_v13 = vsel %vm187_vm0, %v703_v11, 0 }
  0xf2   :  { %v301_v44 = vpop.f32.mrf.mxu1  ;;  %v273_v48 = vadd.f32 %v272_v43, %v1434_v42  ;;  %v753_v43 = vsel %vm187_vm0, %v706_v39, 0  ;;  %v692_v39 = vpack.c.bf16 %v662_v37, %v661_v36 }
  0xf3   :  { %v302_v49 = vadd.f32 %v301_v44, %v1434_v42  ;;  %v1490_v44 = vld [vmem:[%s1908_s3 + $0x8] sm:$0xff] }
  0xf4   :  { %v318_v57 = vmax.f32 %v273_v48, 0.0  ;;  %v671_v48 = vld [vmem:[%s1905_s0 + $0x160] sm:$0xff] }
  0xf5   :  { %v319_v61 = vmax.f32 %v302_v49, 0.0  ;;  %v672_v49 = vld [vmem:[%s1905_s0 + $0x168] sm:$0xff] }
  0xf6   :  { %v697_v51 = vpack.c.bf16 %v672_v49, %v671_v48  ;;  %v711_v48 = vsel %vm187_vm0, %v692_v39, 0  ;;  %v659_v49 = vld [vmem:[%s1905_s0 + $0x100] sm:$0xff] }
  0xf8   :  { %v726_v54 = vsel %vm187_vm0, %v697_v51, 0  ;;  %v675_v51 = vld [vmem:[%s1905_s0 + $0x180] sm:$0xff] }
  0xf9   :  { %v274_v50 = vpop.f32.mrf.mxu0 }
  0xfa   :  { %v275_v52 = vadd.f32 %v274_v50, %v1440_v47  ;;  %v303_v53 = vpop.f32.mrf.mxu1  ;;  %v687_v50 = vld [vmem:[%s1905_s0 + $0x1e0] sm:$0xff] }
  0xfb   :  { %v304_v55 = vadd.f32 %v303_v53, %v1440_v47 }
  0xfc   :  { %v320_v58 = vmax.f32 %v275_v52, 0.0  ;;  %v688_v52 = vld [vmem:[%s1905_s0 + $0x1e8] sm:$0xff] }
  0xfd   :  { %v321_v62 = vmax.f32 %v304_v55, 0.0  ;;  %v705_v53 = vpack.c.bf16 %v688_v52, %v687_v50  ;;  %v660_v50 = vld [vmem:[%s1905_s0 + $0x108] sm:$0xff] }
  0xfe   :  { %v328_v1 = vpack.c.bf16 %v320_v58, %v318_v57  ;;  %v669_v57 = vld [vmem:[%s1905_s0 + $0x150] sm:$0xff]  ;;  %v670_v58 = vld [vmem:[%s1905_s0 + $0x158] sm:$0xff] }
  0xff   :  { %v329_v5 = vpack.c.bf16 %v321_v62, %v319_v61  ;;  %v750_v55 = vsel %vm187_vm0, %v705_v53, 0  ;;  %v696_v61 = vpack.c.bf16 %v670_v58, %v669_v57  ;;  %v686_v62 = vld [vmem:[%s1905_s0 + $0x1d8] sm:$0xff]  ;;  %v676_v53 = vld [vmem:[%s1905_s0 + $0x188] sm:$0xff] }
 0x100   :  { %479 = vmatpush.bf16.msra.mxu2 %v328_v1  ;;  %v704_v63 = vpack.c.bf16 %v686_v62, %v685_v60  ;;  %v1633_v60 = vld [vmem:[%s1908_s3 + $0x30] sm:$0xff]  ;;  %v1646_v62 = vpop.permute.xlu2 %402 }
 0x101   :  { %528 = vmatpush.bf16.msra.mxu3 %v329_v5  ;;  %v723_v0 = vsel %vm187_vm0, %v696_v61, 0  ;;  %v668_v5 = vld [vmem:[%s1905_s0 + $0x148] sm:$0xff]  ;;  %v1642_v61 = vld [vmem:[%s1908_s3 + $0x38] sm:$0xff]  ;;  %1927 = vst [vmem:[#allocation6_spill] sm:$0xff] %v1646_v62 }
 0x102   :  { %v747_v1 = vsel %vm187_vm0, %v704_v63, 0  ;;  %v695_v7 = vpack.c.bf16 %v668_v5, %v667_v4  ;;  %v1650_v63 = vpop.permute.xlu0 %407 }
 0x104   :  { %480 = vmatpush.bf16.msra.mxu2 %v326_v14  ;;  %v720_v12 = vsel %vm187_vm0, %v695_v7, 0  ;;  %v1559_v14 = vld [vmem:[%s1908_s3 + $0x20] sm:$0xff] }
 0x105   :  { %529 = vmatpush.bf16.msra.mxu3 %v327_v18  ;;  %v681_v18 = vld [vmem:[%s1905_s0 + $0x1b0] sm:$0xff] }
 0x106   :  { %v702_v21 = vpack.c.bf16 %v682_v20, %v681_v18 }
 0x108   :  { %481 = vmatpush.bf16.msra.mxu2 %v324_v25  ;;  %v664_v25 = vld [vmem:[%s1905_s0 + $0x128] sm:$0xff] }
 0x109   :  { %530 = vmatpush.bf16.msra.mxu3 %v325_v28  ;;  %v741_v28 = vsel %vm187_vm0, %v702_v21, 0  ;;  %v693_v31 = vpack.c.bf16 %v664_v25, %v663_v24 }
 0x10c   :  { %482 = vmatpush.bf16.msra.mxu2 %v322_v34  ;;  %v701_v34 = vpack.c.bf16 %v680_v33, %v679_v27 }
 0x10d   :  { %531 = vmatpush.bf16.msra.mxu3 %v323_v32  ;;  %v714_v32 = vsel %vm187_vm0, %v693_v31, 0 }
 0x10e   :  { %v738_v30 = vsel %vm187_vm0, %v701_v34, 0 }
 0x10f   :  { %1087 = vmatmul.msk.bf16.vlgmr.msra.gmra.mxu2 %vm450_vm1, %v1467_v29 }
 0x110   :  { %1095 = vmatmul.msk.bf16.vlgmr.msra.gmra.mxu3 %vm450_vm1, %v1467_v29  ;;  %755 = vmatpush.bf16.xpose.msrb.mxu2 %v729_v40  ;;  %v678_v40 = vld [vmem:[%s1905_s0 + $0x198] sm:$0xff] }
 0x111   :  { %784 = vmatpush.bf16.xpose.msrb.mxu3 %v753_v43  ;;  %v700_v43 = vpack.c.bf16 %v678_v40, %v677_v38 }
 0x113   :  { %v735_v52 = vsel %vm187_vm0, %v700_v43, 0 }
 0x118   :  { %756 = vmatpush.bf16.xpose.msrb.mxu2 %v726_v54  ;;  %v691_v54 = vpack.c.bf16 %v660_v50, %v659_v49 }
 0x119   :  { %785 = vmatpush.bf16.xpose.msrb.mxu3 %v750_v55  ;;  %v699_v55 = vpack.c.bf16 %v676_v53, %v675_v51 }
 0x11a   :  { %v708_v57 = vsel %vm187_vm0, %v691_v54, 0 }
 0x11b   :  { %v732_v58 = vsel %vm187_vm0, %v699_v55, 0 }
 0x11f   :  { %1088 = vmatmul.msk.bf16.gmra.mxu2 %vm450_vm1, %v1490_v44 }
 0x120   :  { %1096 = vmatmul.msk.bf16.gmra.mxu3 %vm450_vm1, %v1490_v44  ;;  %757 = vmatpush.bf16.xpose.msrb.mxu2 %v723_v0  ;;  %v1652_v0 = vpop.permute.xlu2 %397 }
 0x121   :  { %786 = vmatpush.bf16.xpose.msrb.mxu3 %v747_v1  ;;  %1928 = vst [vmem:[#allocation7_spill] sm:$0xff] %v1652_v0  ;;  %v1654_v1 = vpop.permute.xlu0 %382 }
 0x128   :  { %758 = vmatpush.bf16.xpose.msrb.mxu2 %v720_v12  ;;  %v1664_v6 = vpop.permute.xlu2 %372  ;;  %v1672_v12 = vpop.permute.xlu1 %392 }
 0x129   :  { %787 = vmatpush.bf16.xpose.msrb.mxu3 %v744_v13  ;;  %v1666_v7 = vpop.permute.xlu0 %377 }
 0x12f   :  { %1089 = vmatmul.msk.bf16.gmra.mxu2 %vm450_vm1, %v1513_v56 }
 0x130   :  { %1097 = vmatmul.msk.bf16.gmra.mxu3 %vm450_vm1, %v1513_v56  ;;  %759 = vmatpush.bf16.xpose.msrb.mxu2 %v717_v22  ;;  %v1674_v13 = vpop.permute.xlu2 %367  ;;  %v1682_v18 = vpop.permute.xlu1 %387 }
 0x131   :  { %788 = vmatpush.bf16.xpose.msrb.mxu3 %v741_v28  ;;  %1929 = vst [vmem:[#allocation8_spill] sm:$0xff] %v1674_v13 }
 0x138   :  { %760 = vmatpush.bf16.xpose.msrb.mxu2 %v714_v32  ;;  %v1684_v19 = vpop.permute.xlu2 %342 }
 0x139   :  { %789 = vmatpush.bf16.xpose.msrb.mxu3 %v738_v30  ;;  %v1696_v30 = vpop.permute.xlu1 %362 }
 0x13a   :  { %1932 = vst [vmem:[#allocation11_spill] sm:$0xff] %v1696_v30 }
 0x13f   :  { %1090 = vmatmul.msk.bf16.gmra.mxu2 %vm450_vm1, %v1536_v3 }
 0x140   :  { %1098 = vmatmul.msk.bf16.gmra.mxu3 %vm450_vm1, %v1536_v3  ;;  %761 = vmatpush.bf16.xpose.msrb.mxu2 %v711_v48 }
 0x141   :  { %790 = vmatpush.bf16.xpose.msrb.mxu3 %v735_v52  ;;  %v1703_v40 = vpop.permute.xlu1 %357 }
 0x142   :  { %1933 = vst [vmem:[#allocation12_spill] sm:$0xff] %v1703_v40 }
 0x148   :  { %762 = vmatpush.bf16.xpose.msrb.mxu2 %v708_v57 }
 0x149   :  { %791 = vmatpush.bf16.xpose.msrb.mxu3 %v732_v58 }
 0x14f   :  { %1091 = vmatmul.msk.bf16.gmra.mxu2 %vm450_vm1, %v1559_v14 }
 0x150   :  { %1099 = vmatmul.msk.bf16.gmra.mxu3 %vm450_vm1, %v1559_v14 }
 0x15f   :  { %1092 = vmatmul.msk.bf16.gmra.mxu2 %vm450_vm1, %v1596_v35 }
 0x160   :  { %1100 = vmatmul.msk.bf16.gmra.mxu3 %vm450_vm1, %v1596_v35 }
 0x16f   :  { %1093 = vmatmul.msk.bf16.gmra.mxu2 %vm450_vm1, %v1633_v60 }
 0x170   :  { %1101 = vmatmul.msk.bf16.gmra.mxu3 %vm450_vm1, %v1633_v60 }
 0x17f   :  { %1094 = vmatmul.msk.bf16.gmra.mxu2 %vm450_vm1, %v1642_v61 }
 0x180   :  { %1102 = vmatmul.msk.bf16.gmra.mxu3 %vm450_vm1, %v1642_v61 }
 0x18f   :  { %1103 = vmatmul.msk.bf16.vlgmr.msrb.gmra.mxu2 %vm187_vm0, %v1351_v9 }
 0x190   :  { %1107 = vmatmul.msk.bf16.vlgmr.msrb.gmra.mxu3 %vm187_vm0, %v1351_v9  ;;  %v1678_v9 = vpop.permute.xlu0 %352 }
 0x191   :  { %1930 = vst [vmem:[#allocation9_spill] sm:$0xff] %v1678_v9 }
 0x192   :  { %v1660_v4 = vpop.f32.mrf.mxu2 }
 0x193   :  { %v1662_v5 = vpop.f32.mrf.mxu3 }
 0x198   :  { %v1687_v21 = vpop.permute.xlu0 %347 }
 0x199   :  { %1931 = vst [vmem:[#allocation10_spill] sm:$0xff] %v1687_v21 }
 0x19a   :  { %v1668_v10 = vpop.f32.mrf.mxu2 }
 0x19b   :  { %v1670_v11 = vpop.f32.mrf.mxu3 }
 0x19f   :  { %1104 = vmatmul.msk.bf16.gmra.mxu2 %vm187_vm0, %v1378_v16 }
 0x1a0   :  { %1108 = vmatmul.msk.bf16.gmra.mxu3 %vm187_vm0, %v1378_v16 }
 0x1a2   :  { %v489_v15 = vpop.f32.mrf.mxu2 }
 0x1a3   :  { %v538_v17 = vpop.f32.mrf.mxu3  ;;  %v490_v20 = vadd.f32 %v489_v15, %v1684_v19 }
 0x1a4   :  { %v539_v22 = vadd.f32 %v538_v17, %v1684_v19 }
 0x1a5   :  { %v577_v33 = vmax.f32 %v490_v20, 0.0 }
 0x1a6   :  { %v578_v31 = vmax.f32 %v539_v22, 0.0 }
 0x1aa   :  { %v491_v24 = vpop.f32.mrf.mxu2 }
 0x1ab   :  { %v492_v25 = vadd.f32 %v491_v24, %v1687_v21  ;;  %v540_v27 = vpop.f32.mrf.mxu3 }
 0x1ac   :  { %v541_v28 = vadd.f32 %v540_v27, %v1687_v21 }
 0x1ad   :  { %v579_v16 = vmax.f32 %v492_v25, 0.0 }
 0x1ae   :  { %v580_v34 = vmax.f32 %v541_v28, 0.0 }
 0x1af   :  { %1105 = vmatmul.msk.bf16.gmra.mxu2 %vm187_vm0, %v1405_v23  ;;  %v1694_v32 = vpack.c.bf16 %v579_v16, %v577_v33 }
 0x1b0   :  { %1109 = vmatmul.msk.bf16.gmra.mxu3 %vm187_vm0, %v1405_v23  ;;  %v1700_v36 = vpack.c.bf16 %v580_v34, %v578_v31 }
 0x1b2   :  { %v494_v37 = vpop.f32.mrf.mxu2 }
 0x1b3   :  { %v543_v38 = vpop.f32.mrf.mxu3  ;;  %v495_v39 = vadd.f32 %v494_v37, %v1678_v9 }
 0x1b4   :  { %v544_v43 = vadd.f32 %v543_v38, %v1678_v9 }
 0x1b5   :  { %v581_v52 = vmax.f32 %v495_v39, 0.0 }
 0x1b6   :  { %v582_v54 = vmax.f32 %v544_v43, 0.0 }
 0x1ba   :  { %v496_v48 = vpop.f32.mrf.mxu2 }
 0x1bb   :  { %v497_v49 = vadd.f32 %v496_v48, %v1703_v40  ;;  %v545_v50 = vpop.f32.mrf.mxu3 }
 0x1bc   :  { %v546_v51 = vadd.f32 %v545_v50, %v1703_v40 }
 0x1bd   :  { %v583_v53 = vmax.f32 %v497_v49, 0.0 }
 0x1be   :  { %v584_v23 = vmax.f32 %v546_v51, 0.0 }
 0x1bf   :  { %1106 = vmatmul.msk.bf16.gmra.mxu2 %vm187_vm0, %v1420_v26  ;;  %v1710_v55 = vpack.c.bf16 %v583_v53, %v581_v52 }
 0x1c0   :  { %1110 = vmatmul.msk.bf16.gmra.mxu3 %vm187_vm0, %v1420_v26  ;;  %v1714_v57 = vpack.c.bf16 %v584_v23, %v582_v54 }
 0x1c2   :  { %v499_v58 = vpop.f32.mrf.mxu2 }
 0x1c3   :  { %v548_v15 = vpop.f32.mrf.mxu3  ;;  %v500_v17 = vadd.f32 %v499_v58, %v1696_v30 }
 0x1c4   :  { %v549_v20 = vadd.f32 %v548_v15, %v1696_v30 }
 0x1c5   :  { %v585_v28 = vmax.f32 %v500_v17, 0.0 }
 0x1c6   :  { %v586_v16 = vmax.f32 %v549_v20, 0.0 }
 0x1ca   :  { %v501_v22 = vpop.f32.mrf.mxu2 }
 0x1cb   :  { %v502_v24 = vadd.f32 %v501_v22, %v1674_v13  ;;  %v550_v25 = vpop.f32.mrf.mxu3 }
 0x1cc   :  { %v551_v27 = vadd.f32 %v550_v25, %v1674_v13 }
 0x1cd   :  { %v587_v33 = vmax.f32 %v502_v24, 0.0 }
 0x1ce   :  { %v588_v31 = vmax.f32 %v551_v27, 0.0 }
 0x1cf   :  { %v1720_v34 = vpack.c.bf16 %v587_v33, %v585_v28 }
 0x1d0   :  { %v1722_v26 = vpack.c.bf16 %v588_v31, %v586_v16 }
 0x1d2   :  { %v504_v37 = vpop.f32.mrf.mxu2 }
 0x1d3   :  { %v553_v38 = vpop.f32.mrf.mxu3 }
 0x1da   :  { %v506_v39 = vpop.f32.mrf.mxu2 }
 0x1db   :  { %v555_v43 = vpop.f32.mrf.mxu3 }
 0x1e2   :  { %v509_v48 = vpop.f32.mrf.mxu2 }
 0x1e3   :  { %v558_v49 = vpop.f32.mrf.mxu3 }
 0x1ea   :  { %v511_v50 = vpop.f32.mrf.mxu2 }
 0x1eb   :  { %v560_v51 = vpop.f32.mrf.mxu3 }
 0x1f2   :  { %v514_v52 = vpop.f32.mrf.mxu2 }
 0x1f3   :  { %v563_v53 = vpop.f32.mrf.mxu3  ;;  %v515_v16 = vadd.f32 %v514_v52, %v1672_v12  ;;  %v559_v52 = vadd.f32 %v558_v49, %v1654_v1 }
 0x1f4   :  { %v564_v30 = vadd.f32 %v563_v53, %v1672_v12  ;;  %v507_v53 = vadd.f32 %v506_v39, %v1666_v7 }
 0x1fa   :  { %v516_v54 = vpop.f32.mrf.mxu2 }
 0x1fb   :  { %v565_v23 = vpop.f32.mrf.mxu3  ;;  %v517_v24 = vadd.f32 %v516_v54, %v1652_v0  ;;  %v561_v54 = vadd.f32 %v560_v51, %v1682_v18  ;;  %v556_v51 = vadd.f32 %v555_v43, %v1666_v7 }
 0x1fc   :  { %v566_v28 = vadd.f32 %v565_v23, %v1652_v0  ;;  %v510_v23 = vadd.f32 %v509_v48, %v1654_v1  ;;  %v597_v0 = vmax.f32 %v515_v16, 0.0  ;;  %v505_v48 = vadd.f32 %v504_v37, %v1664_v6 }
 0x202   :  { %v519_v58 = vpop.f32.mrf.mxu2 }
 0x203   :  { %v568_v15 = vpop.f32.mrf.mxu3  ;;  %v520_v17 = vadd.f32 %v519_v58, %v1646_v62 }
 0x204   :  { %v569_v20 = vadd.f32 %v568_v15, %v1646_v62  ;;  %v512_v15 = vadd.f32 %v511_v50, %v1682_v18  ;;  %v599_v62 = vmax.f32 %v517_v24, 0.0  ;;  %v596_v24 = vmax.f32 %v561_v54, 0.0  ;;  %v1754_v54 = vpop.permute.xlu1 %332 }
 0x205   :  { %v601_v31 = vmax.f32 %v520_v17, 0.0  ;;  %v598_v17 = vmax.f32 %v564_v30, 0.0  ;;  %v594_v30 = vmax.f32 %v559_v52, 0.0 }
 0x206   :  { %v602_v40 = vmax.f32 %v569_v20, 0.0  ;;  %v595_v20 = vmax.f32 %v512_v15, 0.0 }
 0x207   :  { %v616_v39 = vpack.c.bf16 %v596_v24, %v594_v30 }
 0x20a   :  { %v521_v22 = vpop.f32.mrf.mxu2 }
 0x20b   :  { %v522_v25 = vadd.f32 %v521_v22, %v1650_v63  ;;  %v570_v27 = vpop.f32.mrf.mxu3  ;;  %v600_v22 = vmax.f32 %v566_v28, 0.0  ;;  %v592_v28 = vmax.f32 %v556_v51, 0.0 }
 0x20c   :  { %v571_v33 = vadd.f32 %v570_v27, %v1650_v63  ;;  %v593_v27 = vmax.f32 %v510_v23, 0.0  ;;  %v485_v23 = vadd.f32 %v1660_v4, %v1754_v54  ;;  %v1769_v4 = vld [vmem:[%s1910_s5] sm:$0x1] }
 0x20d   :  { %v603_v13 = vmax.f32 %v522_v25, 0.0 }
 0x20e   :  { %v604_v58 = vmax.f32 %v571_v33, 0.0  ;;  %v615_v49 = vpack.c.bf16 %v595_v20, %v593_v27  ;;  %v589_v33 = vmax.f32 %v505_v48, 0.0 }
 0x20f   :  { %v619_v9 = vpack.c.bf16 %v603_v13, %v601_v31  ;;  %v617_v13 = vpack.c.bf16 %v599_v62, %v597_v0 }
 0x210   :  { %v620_v21 = vpack.c.bf16 %v604_v58, %v602_v40  ;;  %v618_v40 = vpack.c.bf16 %v600_v22, %v598_v17  ;;  %v573_v17 = vmax.f32 %v485_v23, 0.0 }
 0x211   :  { %622 = vmatpush.bf16.msrb.mxu0 %v619_v9  ;;  %v554_v9 = vadd.f32 %v553_v38, %v1664_v6  ;;  %v1749_v38 = vpop.permute.xlu2 %337 }
 0x212   :  { %635 = vmatpush.bf16.msrb.mxu1 %v620_v21  ;;  %v1736_v25 = vpop.f32.mrf.mxu2  ;;  %v591_v21 = vmax.f32 %v507_v53, 0.0  ;;  %v487_v58 = vadd.f32 %v1668_v10, %v1749_v38  ;;  %v536_v22 = vadd.f32 %v1670_v11, %v1749_v38 }
 0x213   :  { %v1739_v50 = vpop.f32.mrf.mxu3  ;;  %v590_v16 = vmax.f32 %v554_v9, 0.0 }
 0x214   :  { %v613_v43 = vpack.c.bf16 %v591_v21, %v589_v33  ;;  %v576_v52 = vmax.f32 %v536_v22, 0.0 }
 0x215   :  { %623 = vmatpush.bf16.msrb.mxu0 %v617_v13  ;;  %v614_v37 = vpack.c.bf16 %v592_v28, %v590_v16 }
 0x216   :  { %636 = vmatpush.bf16.msrb.mxu1 %v618_v40 }
 0x219   :  { %624 = vmatpush.bf16.msrb.mxu0 %v615_v49 }
 0x21a   :  { %637 = vmatpush.bf16.msrb.mxu1 %v616_v39  ;;  %v1744_v62 = vpop.f32.mrf.mxu2 }
 0x21b   :  { %v1746_v0 = vpop.f32.mrf.mxu3 }
 0x21d   :  { %625 = vmatpush.bf16.msrb.mxu0 %v613_v43 }
 0x21e   :  { %638 = vmatpush.bf16.msrb.mxu1 %v614_v37 }
 0x221   :  { %626 = vmatpush.bf16.msrb.mxu0 %v1720_v34  ;;  %v534_v34 = vadd.f32 %v1662_v5, %v1754_v54 }
 0x222   :  { %639 = vmatpush.bf16.msrb.mxu1 %v1722_v26  ;;  %v769_v31 = vpop.f32.mrf.mxu2  ;;  %v575_v26 = vmax.f32 %v487_v58, 0.0 }
 0x223   :  { %v798_v15 = vpop.f32.mrf.mxu3  ;;  %v574_v10 = vmax.f32 %v534_v34, 0.0 }
 0x224   :  { %v605_v20 = vpack.c.bf16 %v575_v26, %v573_v17 }
 0x225   :  { %627 = vmatpush.bf16.msrb.mxu0 %v1710_v55  ;;  %v606_v13 = vpack.c.bf16 %v576_v52, %v574_v10 }
 0x226   :  { %640 = vmatpush.bf16.msrb.mxu1 %v1714_v57 }
 0x229   :  { %628 = vmatpush.bf16.msrb.mxu0 %v1694_v32 }
 0x22a   :  { %641 = vmatpush.bf16.msrb.mxu1 %v1700_v36  ;;  %v771_v53 = vpop.f32.mrf.mxu2 }
 0x22b   :  { %v800_v11 = vpop.f32.mrf.mxu3 }
 0x22c   :  { %v801_v23 = vadd.f32 %v800_v11, %v1449_v59  ;;  %v765_v11 = vadd.f32 %v1736_v25, %v1457_v8 }
 0x22d   :  { %629 = vmatpush.bf16.msrb.mxu0 %v605_v20 }
 0x22e   :  { %642 = vmatpush.bf16.msrb.mxu1 %v606_v13  ;;  %v820_v13 = vmax.f32 %v801_v23, 0.0  ;;  %v1936_v23 = vld [vmem:[#allocation10_spill] sm:$0xff] }
 0x230   :  { %630 = vmatmul.bf16.vlgmr.msrb.gmra.mxu0 %v1769_v4 }
 0x231   :  { %643 = vmatmul.bf16.vlgmr.msrb.gmra.mxu1 %v1769_v4 }
 0x232   :  { %v774_v5 = vpop.f32.mrf.mxu2 }
 0x233   :  { %v803_v32 = vpop.f32.mrf.mxu3  ;;  %v775_v28 = vadd.f32 %v774_v5, %v1432_v41 }
 0x234   :  { %v804_v16 = vadd.f32 %v803_v32, %v1432_v41  ;;  %v767_v41 = vadd.f32 %v1744_v62, %v1453_v2 }
 0x235   :  { %v821_v52 = vmax.f32 %v775_v28, 0.0 }
 0x236   :  { %v822_v17 = vmax.f32 %v804_v16, 0.0  ;;  %v815_v5 = vmax.f32 %v767_v41, 0.0 }
 0x23a   :  { %v776_v55 = vpop.f32.mrf.mxu2 }
 0x23b   :  { %v805_v57 = vpop.f32.mrf.mxu3  ;;  %v777_v27 = vadd.f32 %v776_v55, %v1438_v46 }
 0x23c   :  { %v806_v21 = vadd.f32 %v805_v57, %v1438_v46  ;;  %v770_v46 = vadd.f32 %v769_v31, %v1436_v45  ;;  %v813_v57 = vmax.f32 %v765_v11, 0.0 }
 0x23d   :  { %v823_v58 = vmax.f32 %v777_v27, 0.0 }
 0x23e   :  { %v824_v34 = vmax.f32 %v806_v21, 0.0  ;;  %v817_v31 = vmax.f32 %v770_v46, 0.0 }
 0x23f   :  { %v833_v20 = vpack.c.bf16 %v823_v58, %v821_v52 }
 0x242   :  { %v779_v36 = vpop.f32.mrf.mxu2 }
 0x243   :  { %v808_v51 = vpop.f32.mrf.mxu3  ;;  %v780_v24 = vadd.f32 %v779_v36, %v1434_v42 }
 0x244   :  { %v809_v40 = vadd.f32 %v808_v51, %v1434_v42  ;;  %v772_v42 = vadd.f32 %v771_v53, %v1449_v59  ;;  %v796_v53 = vadd.f32 %v1746_v0, %v1453_v2  ;;  %v834_v59 = vpack.c.bf16 %v824_v34, %v822_v17 }
 0x245   :  { %v825_v39 = vmax.f32 %v780_v24, 0.0  ;;  %v829_v2 = vpack.c.bf16 %v815_v5, %v813_v57 }
 0x246   :  { %v826_v43 = vmax.f32 %v809_v40, 0.0  ;;  %v819_v10 = vmax.f32 %v772_v42, 0.0  ;;  %v816_v62 = vmax.f32 %v796_v53, 0.0 }
 0x248   :  { %v831_v32 = vpack.c.bf16 %v819_v10, %v817_v31  ;;  %v1938_v31 = vld [vmem:[#allocation12_spill] sm:$0xff] }
 0x24a   :  { %v781_v48 = vpop.f32.mrf.mxu2 }
 0x24b   :  { %v782_v9 = vadd.f32 %v781_v48, %v1440_v47  ;;  %v810_v30 = vpop.f32.mrf.mxu3 }
 0x24c   :  { %v811_v49 = vadd.f32 %v810_v30, %v1440_v47  ;;  %v799_v47 = vadd.f32 %v798_v15, %v1436_v45  ;;  %v794_v45 = vadd.f32 %v1739_v50, %v1457_v8  ;;  %v1816_v8 = vstv %s1911_s6 }
 0x24d   :  { %v827_v33 = vmax.f32 %v782_v9, 0.0 }
 0x24e   :  { %v828_v37 = vmax.f32 %v811_v49, 0.0  ;;  %v818_v15 = vmax.f32 %v799_v47, 0.0  ;;  %v814_v36 = vmax.f32 %v794_v45, 0.0 }
 0x24f   :  { %v835_v22 = vpack.c.bf16 %v827_v33, %v825_v39 }
 0x250   :  { %v836_v26 = vpack.c.bf16 %v828_v37, %v826_v43  ;;  %v832_v55 = vpack.c.bf16 %v820_v13, %v818_v15  ;;  %v830_v0 = vpack.c.bf16 %v816_v62, %v814_v36  ;;  %v1937_v13 = vld [vmem:[#allocation9_spill] sm:$0xff] }
 0x251   :  { %841 = vmatpush.bf16.msra.mxu0 %v835_v22 }
 0x252   :  { %890 = vmatpush.bf16.msra.mxu1 %v836_v26 }
 0x255   :  { %842 = vmatpush.bf16.msra.mxu0 %v833_v20 }
 0x256   :  { %891 = vmatpush.bf16.msra.mxu1 %v834_v59 }
 0x259   :  { %843 = vmatpush.bf16.msra.mxu0 %v831_v32 }
 0x25a   :  { %892 = vmatpush.bf16.msra.mxu1 %v832_v55 }
 0x25d   :  { %844 = vmatpush.bf16.msra.mxu0 %v829_v2 }
 0x25e   :  { %893 = vmatpush.bf16.msra.mxu1 %v830_v0 }
 0x260   :  { %1111 = vmatmul.msk.bf16.vlgmr.msra.gmra.mxu0 %vm450_vm1, %v1467_v29 }
 0x261   :  { %1119 = vmatmul.msk.bf16.vlgmr.msra.gmra.mxu1 %vm450_vm1, %v1467_v29 }
 0x270   :  { %1112 = vmatmul.msk.bf16.gmra.mxu0 %vm450_vm1, %v1490_v44 }
 0x271   :  { %1120 = vmatmul.msk.bf16.gmra.mxu1 %vm450_vm1, %v1490_v44  ;;  %v654_v44 = vlaneseq }
 0x273   :  { %vm1824_vm3 = vcmp.lt.s32.totalorder %v654_v44, 256  ;;  %v1939_v44 = vld [vmem:[#allocation11_spill] sm:$0xff] }
 0x280   :  { %1113 = vmatmul.msk.bf16.gmra.mxu0 %vm450_vm1, %v1513_v56 }
 0x281   :  { %1121 = vmatmul.msk.bf16.gmra.mxu1 %vm450_vm1, %v1513_v56 }
 0x290   :  { %1114 = vmatmul.msk.bf16.gmra.mxu0 %vm450_vm1, %v1536_v3 }
 0x291   :  { %1122 = vmatmul.msk.bf16.gmra.mxu1 %vm450_vm1, %v1536_v3 }
 0x2a0   :  { %1115 = vmatmul.msk.bf16.gmra.mxu0 %vm450_vm1, %v1559_v14 }
 0x2a1   :  { %1123 = vmatmul.msk.bf16.gmra.mxu1 %vm450_vm1, %v1559_v14 }
 0x2ad   :  { %v631_v29 = vpop.f32.mrf.mxu0 }
 0x2ae   :  { %v644_v56 = vpop.f32.mrf.mxu1  ;;  %v632_v25 = vadd.f32 %v631_v29, %v1816_v8 }
 0x2af   :  { %v645_v50 = vadd.f32 %v644_v56, %v1816_v8 }
 0x2b0   :  { %1116 = vmatmul.msk.bf16.gmra.mxu0 %vm450_vm1, %v1596_v35 }
 0x2b1   :  { %1124 = vmatmul.msk.bf16.gmra.mxu1 %vm450_vm1, %v1596_v35  ;;  %v650_v3 = vrot.slane %v645_v50, 7 }
 0x2b3   :  { %v652_v51 = vsel %vm651_vm2, %v632_v25, %v650_v3  ;;  %v1940_v3 = vld [vmem:[#allocation8_spill] sm:$0xff] }
 0x2b4   :  { %658 = vst.msk [vmem:[#allocation3] sm:$0x3] %vm1824_vm3, %v652_v51 }
 0x2b5   :  { %v633_v24 = vpop.f32.mrf.mxu0 }
 0x2b6   :  { %v646_v40 = vpop.f32.mrf.mxu1 }
 0x2c0   :  { %1117 = vmatmul.msk.bf16.gmra.mxu0 %vm450_vm1, %v1633_v60 }
 0x2c1   :  { %1125 = vmatmul.msk.bf16.gmra.mxu1 %vm450_vm1, %v1633_v60 }
 0x2d0   :  { %1118 = vmatmul.msk.bf16.gmra.mxu0 %vm450_vm1, %v1642_v61 }
 0x2d1   :  { %1126 = vmatmul.msk.bf16.gmra.mxu1 %vm450_vm1, %v1642_v61 }
 0x2dd   :  { %v846_v35 = vpop.f32.mrf.mxu0 }
 0x2de   :  { %v895_v48 = vpop.f32.mrf.mxu1  ;;  %v847_v27 = vadd.f32 %v846_v35, %v1754_v54 }
 0x2df   :  { %v896_v9 = vadd.f32 %v895_v48, %v1754_v54 }
 0x2e0   :  { %v935_v39 = vmax.f32 %v847_v27, 0.0 }
 0x2e1   :  { %v936_v33 = vmax.f32 %v896_v9, 0.0 }
 0x2e5   :  { %v848_v30 = vpop.f32.mrf.mxu0 }
 0x2e6   :  { %v849_v21 = vadd.f32 %v848_v30, %v1749_v38  ;;  %v897_v49 = vpop.f32.mrf.mxu1 }
 0x2e7   :  { %v898_v28 = vadd.f32 %v897_v49, %v1749_v38 }
 0x2e8   :  { %v937_v60 = vmax.f32 %v849_v21, 0.0 }
 0x2e9   :  { %v938_v16 = vmax.f32 %v898_v28, 0.0 }
 0x2ea   :  { %v1843_v43 = vpack.c.bf16 %v937_v60, %v935_v39 }
 0x2eb   :  { %v1845_v37 = vpack.c.bf16 %v938_v16, %v936_v33 }
 0x2ed   :  { %v851_v61 = vpop.f32.mrf.mxu0 }
 0x2ee   :  { %v900_v42 = vpop.f32.mrf.mxu1  ;;  %v852_v58 = vadd.f32 %v851_v61, %v1684_v19 }
 0x2ef   :  { %v901_v54 = vadd.f32 %v900_v42, %v1684_v19 }
 0x2f0   :  { %v939_v46 = vmax.f32 %v852_v58, 0.0 }
 0x2f1   :  { %v940_v47 = vmax.f32 %v901_v54, 0.0 }
 0x2f5   :  { %v853_v22 = vpop.f32.mrf.mxu0 }
 0x2f6   :  { %v854_v34 = vadd.f32 %v853_v22, %v1936_v23  ;;  %v902_v26 = vpop.f32.mrf.mxu1 }
 0x2f7   :  { %v903_v38 = vadd.f32 %v902_v26, %v1936_v23 }
 0x2f8   :  { %v941_v52 = vmax.f32 %v854_v34, 0.0 }
 0x2f9   :  { %v942_v17 = vmax.f32 %v903_v38, 0.0  ;;  %v1941_v38 = vld [vmem:[#allocation6_spill] sm:$0xff] }
 0x2fa   :  { %v1851_v41 = vpack.c.bf16 %v941_v52, %v939_v46 }
 0x2fb   :  { %v1853_v10 = vpack.c.bf16 %v942_v17, %v940_v47  ;;  %v1942_v17 = vld [vmem:[#allocation7_spill] sm:$0xff] }
 0x2fd   :  { %v856_v20 = vpop.f32.mrf.mxu0 }
 0x2fe   :  { %v905_v53 = vpop.f32.mrf.mxu1  ;;  %v857_v59 = vadd.f32 %v856_v20, %v1937_v13 }
 0x2ff   :  { %v906_v19 = vadd.f32 %v905_v53, %v1937_v13 }
 0x300   :  { %v943_v32 = vmax.f32 %v857_v59, 0.0 }
 0x301   :  { %v944_v55 = vmax.f32 %v906_v19, 0.0 }
 0x305   :  { %v858_v11 = vpop.f32.mrf.mxu0 }
 0x306   :  { %v859_v45 = vadd.f32 %v858_v11, %v1938_v31  ;;  %v907_v15 = vpop.f32.mrf.mxu1 }
 0x307   :  { %v908_v5 = vadd.f32 %v907_v15, %v1938_v31 }
 0x308   :  { %v945_v62 = vmax.f32 %v859_v45, 0.0 }
 0x309   :  { %v946_v57 = vmax.f32 %v908_v5, 0.0 }
 0x30a   :  { %v1859_v36 = vpack.c.bf16 %v945_v62, %v943_v32 }
 0x30b   :  { %v1861_v2 = vpack.c.bf16 %v946_v57, %v944_v55 }
 0x30d   :  { %v861_v0 = vpop.f32.mrf.mxu0 }
 0x30e   :  { %v910_v29 = vpop.f32.mrf.mxu1  ;;  %v862_v56 = vadd.f32 %v861_v0, %v1939_v44 }
 0x30f   :  { %v911_v25 = vadd.f32 %v910_v29, %v1939_v44 }
 0x310   :  { %v947_v35 = vmax.f32 %v862_v56, 0.0 }
 0x311   :  { %v948_v27 = vmax.f32 %v911_v25, 0.0 }
 0x315   :  { %v863_v50 = vpop.f32.mrf.mxu0 }
 0x316   :  { %v864_v51 = vadd.f32 %v863_v50, %v1940_v3  ;;  %v912_v24 = vpop.f32.mrf.mxu1 }
 0x317   :  { %v913_v40 = vadd.f32 %v912_v24, %v1940_v3 }
 0x318   :  { %v949_v48 = vmax.f32 %v864_v51, 0.0 }
 0x319   :  { %v950_v9 = vmax.f32 %v913_v40, 0.0 }
 0x31a   :  { %v1867_v30 = vpack.c.bf16 %v949_v48, %v947_v35 }
 0x31b   :  { %v1869_v21 = vpack.c.bf16 %v950_v9, %v948_v27 }
 0x31d   :  { %v866_v49 = vpop.f32.mrf.mxu0 }
 0x31e   :  { %v915_v28 = vpop.f32.mrf.mxu1 }
 0x31f   :  { %v916_v27 = vadd.f32 %v915_v28, %v1664_v6 }
 0x325   :  { %v868_v39 = vpop.f32.mrf.mxu0 }
 0x326   :  { %v917_v60 = vpop.f32.mrf.mxu1 }
 0x327   :  { %v918_v24 = vadd.f32 %v917_v60, %v1666_v7 }
 0x32d   :  { %v871_v33 = vpop.f32.mrf.mxu0 }
 0x32e   :  { %v920_v16 = vpop.f32.mrf.mxu1  ;;  %v872_v56 = vadd.f32 %v871_v33, %v1654_v1 }
 0x330   :  { %v955_v48 = vmax.f32 %v872_v56, 0.0 }
 0x335   :  { %v873_v61 = vpop.f32.mrf.mxu0 }
 0x336   :  { %v922_v42 = vpop.f32.mrf.mxu1  ;;  %v874_v62 = vadd.f32 %v873_v61, %v1682_v18 }
 0x337   :  { %v923_v0 = vadd.f32 %v922_v42, %v1682_v18  ;;  %v867_v18 = vadd.f32 %v866_v49, %v1664_v6 }
 0x338   :  { %v957_v3 = vmax.f32 %v874_v62, 0.0 }
 0x339   :  { %v958_v40 = vmax.f32 %v923_v0, 0.0  ;;  %v951_v42 = vmax.f32 %v867_v18, 0.0 }
 0x33d   :  { %v876_v58 = vpop.f32.mrf.mxu0 }
 0x33e   :  { %v925_v54 = vpop.f32.mrf.mxu1  ;;  %v877_v11 = vadd.f32 %v876_v58, %v1672_v12 }
 0x33f   :  { %v926_v15 = vadd.f32 %v925_v54, %v1672_v12  ;;  %v869_v12 = vadd.f32 %v868_v39, %v1666_v7  ;;  %v952_v39 = vmax.f32 %v916_v27, 0.0 }
 0x340   :  { %v959_v25 = vmax.f32 %v877_v11, 0.0 }
 0x341   :  { %v960_v50 = vmax.f32 %v926_v15, 0.0  ;;  %v953_v33 = vmax.f32 %v869_v12, 0.0 }
 0x343   :  { %v975_v58 = vpack.c.bf16 %v953_v33, %v951_v42 }
 0x345   :  { %v878_v22 = vpop.f32.mrf.mxu0 }
 0x346   :  { %v927_v23 = vpop.f32.mrf.mxu1  ;;  %v879_v20 = vadd.f32 %v878_v22, %v1942_v17 }
 0x347   :  { %v928_v59 = vadd.f32 %v927_v23, %v1942_v17 }
 0x348   :  { %v961_v55 = vmax.f32 %v879_v20, 0.0 }
 0x349   :  { %v962_v29 = vmax.f32 %v928_v59, 0.0 }
 0x34a   :  { %v979_v51 = vpack.c.bf16 %v961_v55, %v959_v25 }
 0x34b   :  { %v980_v35 = vpack.c.bf16 %v962_v29, %v960_v50 }
 0x34d   :  { %v881_v34 = vpop.f32.mrf.mxu0 }
 0x34e   :  { %v930_v26 = vpop.f32.mrf.mxu1  ;;  %v882_v46 = vadd.f32 %v881_v34, %v1941_v38 }
 0x34f   :  { %v931_v52 = vadd.f32 %v930_v26, %v1941_v38 }
 0x350   :  { %v963_v31 = vmax.f32 %v882_v46, 0.0 }
 0x351   :  { %v964_v5 = vmax.f32 %v931_v52, 0.0 }
 0x355   :  { %v883_v47 = vpop.f32.mrf.mxu0 }
 0x356   :  { %v884_v53 = vadd.f32 %v883_v47, %v1650_v63  ;;  %v932_v13 = vpop.f32.mrf.mxu1 }
 0x357   :  { %v933_v19 = vadd.f32 %v932_v13, %v1650_v63  ;;  %v921_v63 = vadd.f32 %v920_v16, %v1654_v1  ;;  %v977_v1 = vpack.c.bf16 %v957_v3, %v955_v48  ;;  %v954_v16 = vmax.f32 %v918_v24, 0.0 }
 0x358   :  { %v965_v45 = vmax.f32 %v884_v53, 0.0 }
 0x359   :  { %v966_v32 = vmax.f32 %v933_v19, 0.0  ;;  %v956_v9 = vmax.f32 %v921_v63, 0.0  ;;  %v976_v7 = vpack.c.bf16 %v954_v16, %v952_v39 }
 0x35a   :  { %v981_v57 = vpack.c.bf16 %v965_v45, %v963_v31 }
 0x35b   :  { %v982_v44 = vpack.c.bf16 %v966_v32, %v964_v5  ;;  %v978_v61 = vpack.c.bf16 %v958_v40, %v956_v9 }
 0x35c   :  { %983 = vmatpush.bf16.msra.mxu2 %v981_v57 }
 0x35d   :  { %996 = vmatpush.bf16.msra.mxu3 %v982_v44 }
 0x360   :  { %984 = vmatpush.bf16.msra.mxu2 %v979_v51 }
 0x361   :  { %997 = vmatpush.bf16.msra.mxu3 %v980_v35 }
 0x364   :  { %985 = vmatpush.bf16.msra.mxu2 %v977_v1 }
 0x365   :  { %998 = vmatpush.bf16.msra.mxu3 %v978_v61 }
 0x368   :  { %986 = vmatpush.bf16.msra.mxu2 %v975_v58 }
 0x369   :  { %999 = vmatpush.bf16.msra.mxu3 %v976_v7 }
 0x36c   :  { %987 = vmatpush.bf16.msra.mxu2 %v1867_v30 }
 0x36d   :  { %1000 = vmatpush.bf16.msra.mxu3 %v1869_v21 }
 0x370   :  { %988 = vmatpush.bf16.msra.mxu2 %v1859_v36 }
 0x371   :  { %1001 = vmatpush.bf16.msra.mxu3 %v1861_v2 }
 0x374   :  { %989 = vmatpush.bf16.msra.mxu2 %v1851_v41 }
 0x375   :  { %1002 = vmatpush.bf16.msra.mxu3 %v1853_v10 }
 0x378   :  { %990 = vmatpush.bf16.msra.mxu2 %v1843_v43 }
 0x379   :  { %1003 = vmatpush.bf16.msra.mxu3 %v1845_v37 }
 0x37b   :  { %991 = vmatmul.bf16.vlgmr.msra.gmra.mxu2 %v1769_v4 }
 0x37c   :  { %1004 = vmatmul.bf16.vlgmr.msra.gmra.mxu3 %v1769_v4 }
 0x3fe   :  { %v992_v6 = vpop.f32.mrf.mxu2 }
 0x3ff   :  { %v1005_v30 = vpop.f32.mrf.mxu3  ;;  %v993_v36 = vadd.f32 %v992_v6, %v1816_v8 }
 0x400   :  { %v1006_v21 = vadd.f32 %v1005_v30, %v1816_v8 }
 0x402   :  { %v1011_v49 = vrot.slane %v1006_v21, 7 }
 0x404   :  { %v1012_v2 = vsel %vm651_vm2, %v993_v36, %v1011_v49 }
 0x405   :  { %1014 = vst.msk [vmem:[#allocation3 + $0x2] sm:$0x3] %vm1824_vm3, %v1012_v2 }
 0x406   :  { %v994_v41 = vpop.f32.mrf.mxu2 }
 0x407   :  { %v1007_v43 = vpop.f32.mrf.mxu3 }
 0x408   :  { %1018 = vsyncadd [#allocation4], 16  ;;  %s1022_s29 = sshll.u32 %s1912_s7, 4  ;;  %s1171_s30 = smov [#allocation3]   ;;  %s1023_s29 = int_to_ptr.hbm [resolvable:$true] %s1022_s29 }
 0x409   :  { %s1020_s8 = sshll.u32 %s1171_s30, 4  ;;  %s1021_s8 = int_to_ptr.vmem [resolvable:$true] %s1020_s8 }
 0x40a   :  { %1025 = dma.vmem_to_hbm [thread:$0]  %s1021_s8, 48, %s1023_s29, [#allocation4]  }
 0x40b   :  { %1168 = dma.done.wait [#allocation4], 64  }
 0x40c   :  { %1169 = vsyncadd [#allocation4], 4294967232 }
 0x40d   :  { %1030 = vsyncpa [#allocation4], 1 }

</bundles_post_ra>
